<compile_context>
chip_gen: v7x
topology: tpu7x:2x2x1
jax: 0.10.0
libtpu: 0.0.40
codegen_flags: <defaults>
</compile_context>

<pallas_src>
import functools
import math

import jax
import jax.numpy as jnp
from jax import lax
from jax.experimental import pallas as pl
from jax.experimental.pallas import tpu as pltpu


# --------------------------------------------------------------------------
# Small layout / tiling helpers (all trace-time Python).
# --------------------------------------------------------------------------
def _round_up(n, m):
    return (n + m - 1) // m * m


def _sublane(dtype):
    its = jnp.dtype(dtype).itemsize
    return 8 if its >= 4 else 32 // its          # f32 -> 8, bf16 -> 16, i8 -> 32


def _padded_block_bytes(shape, dtype):
    """VMEM footprint of one block after (sublane, 128) layout padding."""
    its = jnp.dtype(dtype).itemsize
    dims = list(shape)
    if len(dims) >= 1:
        dims[-1] = _round_up(dims[-1], 128)
    if len(dims) >= 2:
        dims[-2] = _round_up(dims[-2], _sublane(dtype))
    n = 1
    for d in dims:
        n *= d
    return n * its


def _largest_divisor_leq(n, cap):
    cap = max(1, min(n, cap))
    for t in range(cap, 0, -1):
        if n % t == 0:
            return t
    return 1


def _vmem_cap_bytes():
    """~3/4 of physical VMEM (v5e/v6e: 128 MiB -> ~96 MiB, v7x: 64 -> ~48)."""
    try:
        info = pltpu.get_tpu_info()
        for attr in ("vmem_capacity_bytes", "vmem_bytes", "vmem_size_bytes"):
            v = getattr(info, attr, None)
            if v:
                return int(v) * 3 // 4
    except Exception:
        pass
    return 48 << 20     # safe on every generation (v7x physical is 64 MiB)


def _choose_reduce_tiles(B, C, HW, dtype, vmem_cap):
    """Pick (Bt, Ct, HWt) for the channel-reduction kernel.

    Bt divides B; HWt divides HW (multiple of 128 unless HWt == HW); Ct is C
    or a multiple of the sublane tile (ragged C tails are masked in-kernel).
    The per-step input block targets a fraction of VMEM so double buffering
    fits on every generation.
    """
    itemsize = jnp.dtype(dtype).itemsize
    sub = _sublane(dtype)
    target = max(256 << 10, min(4 << 20, vmem_cap // 8))

    Ct, HWt = C, HW
    per_b = _padded_block_bytes((1, C, HW), dtype)
    if per_b <= target:
        Bt = _largest_divisor_leq(B, max(1, target // per_b))
    else:
        Bt = 1
        row_bytes = _round_up(HW, 128) * itemsize            # one channel row
        Ct = min(C, max(sub, ((target // max(row_bytes, 1)) // sub) * sub))
        if _padded_block_bytes((1, Ct, HW), dtype) > target and HW % 128 == 0:
            # Tile the lane dimension too (elementwise over HW, no halo).
            max_hwt = max(128, (target // (_round_up(Ct, sub) * itemsize))
                          // 128 * 128)
            HWt = 128
            t = 256
            while t <= min(max_hwt, HW):
                if HW % t == 0:
                    HWt = t
                t += 128
        # If HW is not a multiple of 128 and a single (sublane, HW) slab still
        # exceeds the target, the block is simply allowed to be larger
        # (vmem_limit_bytes below accounts for the true padded size).

    # v7x has 2 TensorCores: expose >= 2 parallel tiles when doing so keeps
    # the per-step block above ~512 KiB (otherwise step overhead dominates).
    if B // Bt == 1 and HW // HWt == 1:
        if B >= 2:
            bt2 = _largest_divisor_leq(B, (B + 1) // 2)
            if _padded_block_bytes((bt2, Ct, HWt), dtype) >= (512 << 10):
                Bt = bt2
        elif HW % 256 == 0 and \
                _padded_block_bytes((Bt, Ct, HW // 2), dtype) >= (512 << 10):
            HWt = HW // 2
    return Bt, Ct, HWt


def _choose_conv_btile(B, Hp, Wp, dtype, vmem_cap):
    per_b = 2 * _padded_block_bytes((1, Hp, Wp), dtype)      # avg + max inputs
    target = max(128 << 10, min(2 << 20, vmem_cap // 16))
    return _largest_divisor_leq(B, max(1, target // max(per_b, 1)))


# --------------------------------------------------------------------------
# Kernel 1: lane-dense channel mean / max (fused single pass over C).
# --------------------------------------------------------------------------
def _channel_reduce_kernel(x_ref, o_ref, sum_ref, max_ref, *,
                           c_total, c_tile, chunk):
    # x_ref:   (Bt, Ct, HWt)   one slab of channels, lane-dense over H*W
    # o_ref:   (Bt, 2,  HWt)   [mean, max] descriptor (resident across C axis)
    # sum_ref: (Bt, 1,  HWt)   running channel sum (f32)
    # max_ref: (Bt, 1,  HWt)   running channel max (input dtype)
    c = pl.program_id(2)
    nc = pl.num_programs(2)

    @pl.when(c == 0)
    def _():
        sum_ref[...] = jnp.zeros_like(sum_ref)
        max_ref[...] = jnp.full_like(max_ref, -jnp.inf)

    ragged = (c_total % c_tile) != 0
    s = sum_ref[...]
    m = max_ref[...]
    # Single fused pass over this channel slab, `chunk` channels at a time:
    # each channel is read once and feeds both the f32 sum and the max.
    for i0 in range(0, c_tile, chunk):
        i1 = min(i0 + chunk, c_tile)
        xc = x_ref[:, i0:i1, :]                              # (Bt, ch, HWt)
        if ragged:
            ids = i0 + lax.broadcasted_iota(jnp.int32, (1, i1 - i0, 1), 1)
            valid = (c * c_tile + ids) < c_total
            xs = jnp.where(valid, xc.astype(jnp.float32), 0.0)
            xm = jnp.where(valid, xc, jnp.array(-jnp.inf, dtype=xc.dtype))
        else:
            xs = xc.astype(jnp.float32)
            xm = xc
        s = s + jnp.sum(xs, axis=1, keepdims=True)
        m = jnp.maximum(m, jnp.max(xm, axis=1, keepdims=True).astype(m.dtype))
    sum_ref[...] = s
    max_ref[...] = m

    @pl.when(c == nc - 1)
    def _():
        o_ref[:, 0:1, :] = (s * (1.0 / c_total)).astype(o_ref.dtype)
        o_ref[:, 1:2, :] = m.astype(o_ref.dtype)


# --------------------------------------------------------------------------
# Kernel 2: kxk conv (2 -> 1 channels) + sigmoid on the tiny (H, W) maps.
# --------------------------------------------------------------------------
def _conv_sigmoid_kernel(avg_ref, max_ref, w_ref, o_ref, *, ksize):
    # avg_ref/max_ref: (Bt, Hp, Wp) zero-padded channel-mean / channel-max
    # w_ref:           (2*k*k,)     SMEM flat conv weights, layout [c_in,ky,kx]
    # o_ref:           (Bt, H, W)
    H = o_ref.shape[1]
    W = o_ref.shape[2]
    KK = ksize * ksize

    # Every tap is loaded directly from the padded refs (no value slicing, no
    # scratch zeroing).  Three independent accumulators keep the VPU add
    # chains short without exhausting the vreg file.
    n_acc = min(3, ksize)
    accs = [None] * n_acc
    for dx in range(ksize):
        g = dx % n_acc
        for dy in range(ksize):
            a = avg_ref[:, dy:dy + H, dx:dx + W].astype(jnp.float32)
            m = max_ref[:, dy:dy + H, dx:dx + W].astype(jnp.float32)
            w_a = w_ref[0 * KK + dy * ksize + dx]
            w_m = w_ref[1 * KK + dy * ksize + dx]
            t = w_a * a + w_m * m
            accs[g] = t if accs[g] is None else accs[g] + t

    conv = accs[0]
    for p in accs[1:]:
        conv = conv + p
    o_ref[...] = jax.nn.sigmoid(conv).astype(o_ref.dtype)


# --------------------------------------------------------------------------
# Wrapper.
# --------------------------------------------------------------------------
def spatial_attention(x, conv_weight, kernel_size=7):
    """x: (B, C, H, W).  conv_weight: (1, 2, k, k).  Returns (B, 1, H, W)."""
    assert kernel_size in (3, 7), "kernel size must be 3 or 7"
    pad = 3 if kernel_size == 7 else 1
    B, C, H, W = x.shape
    HW = H * W
    Hp, Wp = H + 2 * pad, W + 2 * pad

    vmem_cap = _vmem_cap_bytes()

    # ---------------- Stage 1: lane-dense channel mean / max ---------------
    Bt, Ct, HWt = _choose_reduce_tiles(B, C, HW, x.dtype, vmem_cap)
    nb, nhw, nc = B // Bt, HW // HWt, pl.cdiv(C, Ct)
    chunk = _sublane(x.dtype)                    # channels per fused chunk

    # Max path stays in the input dtype (bf16 VALU on v6e/v7x); sum is f32.
    max_dtype = x.dtype if jnp.issubdtype(x.dtype, jnp.floating) else jnp.float32

    est1 = (2 * _padded_block_bytes((Bt, Ct, HWt), x.dtype)     # in, dbl buf
            + 2 * _padded_block_bytes((Bt, 2, HWt), x.dtype)    # out, dbl buf
            + _padded_block_bytes((Bt, 1, HWt), jnp.float32)    # sum scratch
            + _padded_block_bytes((Bt, 1, HWt), max_dtype)      # max scratch
            + (2 << 20))                                        # headroom
    vmem1 = int(min(vmem_cap, max(16 << 20, est1)))

    reduce_kernel = functools.partial(
        _channel_reduce_kernel, c_total=C, c_tile=Ct, chunk=chunk)

    feat = pl.pallas_call(
        reduce_kernel,
        out_shape=jax.ShapeDtypeStruct((B, 2, HW), x.dtype),
        grid=(nb, nhw, nc),
        in_specs=[pl.BlockSpec((Bt, Ct, HWt), lambda b, hw, c: (b, c, hw))],
        out_specs=pl.BlockSpec((Bt, 2, HWt), lambda b, hw, c: (b, 0, hw)),
        scratch_shapes=[pltpu.VMEM((Bt, 1, HWt), jnp.float32),
                        pltpu.VMEM((Bt, 1, HWt), max_dtype)],
        compiler_params=pltpu.CompilerParams(
            dimension_semantics=("parallel", "parallel", "arbitrary"),
            vmem_limit_bytes=vmem1),
    )(x.reshape(B, C, HW))

    # -------- Stage 2: kxk conv + sigmoid on the tiny 2-channel map --------
    # Zero-pad only the (B, 2, H, W) descriptor (tiny, ~2/C of the input) in
    # XLA, then hand the conv kernel two plain (B, Hp, Wp) maps.
    feat = feat.reshape(B, 2, H, W)
    feat_p = jnp.pad(feat, ((0, 0), (0, 0), (pad, pad), (pad, pad)))
    avg_p = feat_p[:, 0]
    max_p = feat_p[:, 1]

    w_flat = conv_weight.reshape(-1).astype(jnp.float32)        # (2*k*k,)

    Bt2 = _choose_conv_btile(B, Hp, Wp, x.dtype, vmem_cap)
    est2 = (4 * _padded_block_bytes((Bt2, Hp, Wp), x.dtype)     # 2 in, dbl buf
            + 2 * _padded_block_bytes((Bt2, H, W), x.dtype)     # out, dbl buf
            + (2 << 20))
    vmem2 = int(min(vmem_cap, max(16 << 20, est2)))

    conv_kernel = functools.partial(_conv_sigmoid_kernel, ksize=kernel_size)

    out = pl.pallas_call(
        conv_kernel,
        out_shape=jax.ShapeDtypeStruct((B, H, W), x.dtype),
        grid=(B // Bt2,),
        in_specs=[
            pl.BlockSpec((Bt2, Hp, Wp), lambda b: (b, 0, 0)),
            pl.BlockSpec((Bt2, Hp, Wp), lambda b: (b, 0, 0)),
            pl.BlockSpec(memory_space=pltpu.MemorySpace.SMEM),
        ],
        out_specs=pl.BlockSpec((Bt2, H, W), lambda b: (b, 0, 0)),
        compiler_params=pltpu.CompilerParams(
            dimension_semantics=("parallel",),
            vmem_limit_bytes=vmem2),
    )(avg_p, max_p, w_flat)

    return out[:, None, :, :]       # (B, 1, H, W), matches the PyTorch module


# --------------------------------------------------------------------------
# Pure-JAX reference (mirrors the PyTorch module).
# --------------------------------------------------------------------------
def _reference(x, conv_weight, kernel_size=7):
    pad = 3 if kernel_size == 7 else 1
    avg = jnp.mean(x, axis=1, keepdims=True)
    mx = jnp.max(x, axis=1, keepdims=True)
    feat = jnp.concatenate([avg, mx], axis=1)
    out = lax.conv_general_dilated(
        feat, conv_weight, window_strides=(1, 1),
        padding=((pad, pad), (pad, pad)),
        dimension_numbers=("NCHW", "OIHW", "NCHW"))
    return jax.nn.sigmoid(out)


if __name__ == "__main__":
    key = jax.random.PRNGKey(0)
    kx, kw = jax.random.split(key)

    B, C, H, W = 2, 4, 16, 16
    ksize = 7

    x = jax.random.normal(kx, (B, C, H, W), dtype=jnp.float32)

    # Conv2d(2, 1, 7, bias=False)-shaped weight, kaiming-uniform-style bound.
    fan_in = 2 * ksize * ksize
    bound = 1.0 / math.sqrt(fan_in)
    conv_weight = jax.random.uniform(
        kw, (1, 2, ksize, ksize), minval=-bound, maxval=bound,
        dtype=jnp.float32)

    out = spatial_attention(x, conv_weight, kernel_size=ksize)
    out = jax.block_until_ready(out)

    ref = _reference(x, conv_weight, kernel_size=ksize)
    assert out.shape == (B, 1, H, W)
    assert jnp.allclose(out, ref, atol=1e-5, rtol=1e-5), "mismatch vs reference"

    print("KERNEL_OK")
</pallas_src>

<mosaic_0001>
module attributes {stable_mosaic.version = 11 : i64} {
  func.func @_channel_reduce_kernel(%arg0: i32, %arg1: i32, %arg2: i32, %arg3: memref<2x4x256xf32, #tpu.memory_space<vmem>>, %arg4: memref<2x2x256xf32, #tpu.memory_space<vmem>>, %arg5: memref<2x1x256xf32, #tpu.memory_space<vmem>>, %arg6: memref<2x1x256xf32, #tpu.memory_space<vmem>>) attributes {dimension_semantics = [#tpu.dimension_semantics<parallel>, #tpu.dimension_semantics<parallel>, #tpu.dimension_semantics<arbitrary>], iteration_bounds = array<i64: 1, 1, 1>, scalar_prefetch = 0 : i64, scratch_operands = 2 : i64, tpu.core_type = #tpu.core_type<tc>, window_params = [{transform_indices = @transform_0, window_bounds = array<i64: 2, 4, 256>}, {transform_indices = @transform_1, window_bounds = array<i64: 2, 2, 256>}]} {
    %c0_i32 = arith.constant 0 : i32
    %0 = arith.cmpi eq, %arg2, %c0_i32 : i32
    %1 = arith.extui %0 : i1 to i32
    %c0_i32_0 = arith.constant 0 : i32
    %2 = arith.cmpi ne, %1, %c0_i32_0 : i32
    scf.if %2 {
      %cst_18 = arith.constant 0.000000e+00 : f32
      %17 = vector.broadcast %cst_18 : f32 to vector<2x1x256xf32>
      %c0_19 = arith.constant 0 : index
      %c0_20 = arith.constant 0 : index
      %c0_21 = arith.constant 0 : index
      %18 = vector.load %arg5[%c0_19, %c0_20, %c0_21] : memref<2x1x256xf32, #tpu.memory_space<vmem>>, vector<2x1x256xf32>
      tpu.vector_store %arg5[%c0_19, %c0_20, %c0_21], %17 {strides = array<i32>} : memref<2x1x256xf32, #tpu.memory_space<vmem>>, vector<2x1x256xf32>,
      %cst_22 = arith.constant 0xFF800000 : f32
      %19 = vector.broadcast %cst_22 : f32 to vector<2x1x256xf32>
      %c0_23 = arith.constant 0 : index
      %c0_24 = arith.constant 0 : index
      %c0_25 = arith.constant 0 : index
      %20 = vector.load %arg6[%c0_23, %c0_24, %c0_25] : memref<2x1x256xf32, #tpu.memory_space<vmem>>, vector<2x1x256xf32>
      tpu.vector_store %arg6[%c0_23, %c0_24, %c0_25], %19 {strides = array<i32>} : memref<2x1x256xf32, #tpu.memory_space<vmem>>, vector<2x1x256xf32>,
    } else {
    }
    %c0 = arith.constant 0 : index
    %c0_1 = arith.constant 0 : index
    %c0_2 = arith.constant 0 : index
    %3 = vector.load %arg5[%c0, %c0_1, %c0_2] : memref<2x1x256xf32, #tpu.memory_space<vmem>>, vector<2x1x256xf32>
    %c0_3 = arith.constant 0 : index
    %c0_4 = arith.constant 0 : index
    %c0_5 = arith.constant 0 : index
    %4 = vector.load %arg6[%c0_3, %c0_4, %c0_5] : memref<2x1x256xf32, #tpu.memory_space<vmem>>, vector<2x1x256xf32>
    %c0_6 = arith.constant 0 : index
    %c0_7 = arith.constant 0 : index
    %c0_8 = arith.constant 0 : index
    %5 = vector.load %arg3[%c0_6, %c0_7, %c0_8] : memref<2x4x256xf32, #tpu.memory_space<vmem>>, vector<2x4x256xf32>
    %cst = arith.constant dense<0.000000e+00> : vector<2x256xf32>
    %6 = vector.multi_reduction <add>, %5, %cst [1] : vector<2x4x256xf32> to vector<2x256xf32>
    %7 = vector.shape_cast %6 : vector<2x256xf32> to vector<2x1x256xf32>
    %8 = arith.addf %3, %7 : vector<2x1x256xf32>
    %cst_9 = arith.constant dense<0xFF800000> : vector<2x256xf32>
    %9 = vector.multi_reduction <maximumf>, %5, %cst_9 [1] : vector<2x4x256xf32> to vector<2x256xf32>
    %10 = vector.shape_cast %9 : vector<2x256xf32> to vector<2x1x256xf32>
    %11 = arith.maximumf %4, %10 : vector<2x1x256xf32>
    %c0_10 = arith.constant 0 : index
    %c0_11 = arith.constant 0 : index
    %c0_12 = arith.constant 0 : index
    %12 = vector.load %arg5[%c0_10, %c0_11, %c0_12] : memref<2x1x256xf32, #tpu.memory_space<vmem>>, vector<2x1x256xf32>
    tpu.vector_store %arg5[%c0_10, %c0_11, %c0_12], %8 {strides = array<i32>} : memref<2x1x256xf32, #tpu.memory_space<vmem>>, vector<2x1x256xf32>,
    %c0_13 = arith.constant 0 : index
    %c0_14 = arith.constant 0 : index
    %c0_15 = arith.constant 0 : index
    %13 = vector.load %arg6[%c0_13, %c0_14, %c0_15] : memref<2x1x256xf32, #tpu.memory_space<vmem>>, vector<2x1x256xf32>
    tpu.vector_store %arg6[%c0_13, %c0_14, %c0_15], %11 {strides = array<i32>} : memref<2x1x256xf32, #tpu.memory_space<vmem>>, vector<2x1x256xf32>,
    %c0_i32_16 = arith.constant 0 : i32
    %14 = arith.cmpi eq, %arg2, %c0_i32_16 : i32
    %15 = arith.extui %14 : i1 to i32
    %c0_i32_17 = arith.constant 0 : i32
    %16 = arith.cmpi ne, %15, %c0_i32_17 : i32
    scf.if %16 {
      %cst_18 = arith.constant 2.500000e-01 : f32
      %17 = vector.broadcast %cst_18 : f32 to vector<2x1x256xf32>
      %18 = arith.mulf %8, %17 : vector<2x1x256xf32>
      %c0_19 = arith.constant 0 : index
      %c0_20 = arith.constant 0 : index
      %c0_21 = arith.constant 0 : index
      %19 = vector.load %arg4[%c0_19, %c0_20, %c0_21] : memref<2x2x256xf32, #tpu.memory_space<vmem>>, vector<2x1x256xf32>
      tpu.vector_store %arg4[%c0_19, %c0_20, %c0_21], %18 {strides = array<i32>} : memref<2x2x256xf32, #tpu.memory_space<vmem>>, vector<2x1x256xf32>,
      %c0_22 = arith.constant 0 : index
      %c1 = arith.constant 1 : index
      %c0_23 = arith.constant 0 : index
      %20 = vector.load %arg4[%c0_22, %c1, %c0_23] : memref<2x2x256xf32, #tpu.memory_space<vmem>>, vector<2x1x256xf32>
      tpu.vector_store %arg4[%c0_22, %c1, %c0_23], %11 {strides = array<i32>} : memref<2x2x256xf32, #tpu.memory_space<vmem>>, vector<2x1x256xf32>,
    } else {
    }
    return
  }
  func.func @transform_0(%arg0: i32, %arg1: i32, %arg2: i32) -> (i32, i32, i32) {
    %c0_i32 = arith.constant 0 : i32
    return %arg0, %arg2, %arg1 : i32, i32, i32
  }
  func.func @transform_1(%arg0: i32, %arg1: i32, %arg2: i32) -> (i32, i32, i32) {
    %c0_i32 = arith.constant 0 : i32
    %c0_i32_0 = arith.constant 0 : i32
    return %arg0, %c0_i32, %arg1 : i32, i32, i32
  }
}

</mosaic_0001>

<bundles_post_ra>
// kernel: tpu_custom_call.1
= control target key start
LH: loop header
LB: loop body
LE: loop exit
PB: predicated region body
PF: predicated region fallthrough
CT: control target
= control target key end

     0   :  { %6 = vsyncpa [#allocation5], 0  ;;  %s355_s0 = inlined_call_operand.hbm [shape: f32[2,4,256], index: 0, kind: input, shape index: {}]   ;;  %s356_s1 = inlined_call_operand.hbm [shape: f32[2,2,256], index: 1, kind: output, shape index: {}]  }
   0x1   :  { %7 = vsyncpa [#allocation6], 0  ;;  %s276_s6 = smov [#allocation4]   ;;  %s228_s10 = scalar_lea.hbm %s355_s0, 256 }
   0x2   :  { %s13_s7 = sshll.u32 %s276_s6, 4  ;;  %p229_p0 = scmp.ne.s32.totalorder %s355_s0, %s228_s10  ;;  %s14_s7 = int_to_ptr.vmem [resolvable:$true] %s13_s7 }
   0x3   :  { %p232_p1 = scmp.lt.u32.totalorder %s228_s10, %s355_s0 }
   0x5   :  { %p234_p2 = pnand %p232_p1, %p229_p0 }
   0x7   :  { %237 = shalt.err (!%p234_p2)
}
   0x8   :  { %s238_s15 = scalar_lea.vmem %s14_s7, 256  ;;  %p243_p4 = scmp.lt.s32.totalorder %s14_s7, %s14_s7 }
   0x9   :  { %p239_p3 = scmp.ne.s32.totalorder %s14_s7, %s238_s15  ;;  %p244_p5 = scmp.lt.s32.totalorder %s238_s15, %s238_s15 }
   0xb   :  { %p245_p6 = por %p244_p5, %p243_p4 }
   0xd   :  { %p246_p7 = pnand %p245_p6, %p239_p3 }
   0xf   :  { %249 = shalt.err (!%p246_p7)
}
  0x10   :  { %s277_s16 = smov 128   ;;  %s278_s17 = smov 8  }
  0x11   :  { %19 = dma.hbm_to_vmem [thread:$0]  %s355_s0, 256, %s14_s7, [#allocation5], %s277_s16, %s277_s16, %s278_s17  }
  0x12   :  { %272 = dma.done.wait [#allocation5], 256  }
  0x13   :  { %273 = vsyncadd [#allocation5], 4294967040  ;;  %v27_v0 = vlaneseq  ;;  %v279_v2 = vmov 0.0   ;;  %v280_v3 = vmov -inf   ;;  %vm47_vm1 = vcmask 1043456   ;;  %v39_v6 = vld [vmem:[#allocation4] sm:$0xff] }
  0x14   :  { %v281_v4 = vmov 1966171168   ;;  %v40_v7 = vld [vmem:[#allocation4 + $0x8] sm:$0xff]  ;;  %v43_v8 = vcombine.high %v39_v6, %v39_v6  ;;  %v48_v9 = vsel %vm47_vm1, %v39_v6, 0.0  ;;  %v114_v14 = vsel %vm47_vm1, %v39_v6, -inf  ;;  %s282_s0 = smov [#allocation7]  }
  0x15   :  { %vm307_vm0 = vcmp.lt.s32.totalorder %v27_v0, 256  ;;  %v82_v5 = vunpack.c.l.s4 %v281_v4  ;;  %v44_v10 = vcombine.high %v40_v7, %v40_v7  ;;  %v62_v11 = vsel %vm47_vm1, %v40_v7, 0.0  ;;  %s205_s20 = sshll.u32 %s282_s0, 4  ;;  %s206_s20 = int_to_ptr.vmem [resolvable:$true] %s205_s20 }
  0x16   :  { %31 = vst.msk [vmem:[#allocation2] sm:$0x3] %vm307_vm0, %v279_v2  ;;  %32 = vst.msk [vmem:[#allocation2 + $0x2] sm:$0x3] %vm307_vm0, %v279_v2  ;;  %v49_v12 = vrot.slane %v48_v9, 4  ;;  %v63_v13 = vrot.slane %v62_v11, 4  ;;  %p255_p9 = scmp.lt.s32.totalorder %s206_s20, %s206_s20 }
  0x17   :  { %33 = vst.msk [vmem:[#allocation3] sm:$0x3] %vm307_vm0, %v280_v3  ;;  %34 = vst.msk [vmem:[#allocation3 + $0x2] sm:$0x3] %vm307_vm0, %v280_v3  ;;  %v128_v15 = vsel %vm47_vm1, %v40_v7, -inf  ;;  %v85_v16 = vshrl.u32 %v27_v0, 7  ;;  %v83_v18 = vunpack.c.0.s8 %v82_v5 }
  0x18   :  { %v55_v17 = vsel %vm47_vm1, %v43_v8, 0.0  ;;  %v69_v19 = vsel %vm47_vm1, %v44_v10, 0.0  ;;  %v50_v20 = vadd.f32 %v49_v12, %v48_v9  ;;  %v64_v22 = vadd.f32 %v63_v13, %v62_v11  ;;  %s250_s21 = scalar_lea.vmem %s206_s20, 128 }
  0x19   :  { %v56_v21 = vrot.slane %v55_v17, 4  ;;  %v70_v23 = vrot.slane %v69_v19, 4  ;;  %v115_v24 = vrot.slane %v114_v14, 4  ;;  %v121_v25 = vsel %vm47_vm1, %v43_v8, -inf  ;;  %p251_p8 = scmp.ne.s32.totalorder %s206_s20, %s250_s21  ;;  %p256_p10 = scmp.lt.s32.totalorder %s250_s21, %s250_s21 }
  0x1a   :  { %v129_v26 = vrot.slane %v128_v15, 4  ;;  %v135_v27 = vsel %vm47_vm1, %v44_v10, -inf  ;;  %v51_v28 = vrot.slane %v50_v20, 2  ;;  %v65_v30 = vrot.slane %v64_v22, 2 }
  0x1b   :  { %v57_v29 = vadd.f32 %v56_v21, %v55_v17  ;;  %v71_v31 = vadd.f32 %v70_v23, %v69_v19  ;;  %v116_v32 = vmax.f32 %v114_v14, %v115_v24  ;;  %v122_v33 = vrot.slane %v121_v25, 4  ;;  %p257_p11 = por %p256_p10, %p255_p9 }
  0x1c   :  { %v130_v34 = vmax.f32 %v128_v15, %v129_v26  ;;  %v136_v35 = vrot.slane %v135_v27, 4  ;;  %v52_v36 = vadd.f32 %v51_v28, %v50_v20  ;;  %v66_v38 = vadd.f32 %v65_v30, %v64_v22 }
  0x1d   :  { %v58_v37 = vrot.slane %v57_v29, 2  ;;  %v72_v39 = vrot.slane %v71_v31, 2  ;;  %v117_v40 = vrot.slane %v116_v32, 2  ;;  %v123_v41 = vmax.f32 %v121_v25, %v122_v33  ;;  %v35_v10 = vld [vmem:[#allocation2] sm:$0x3]  ;;  %p258_p12 = pnand %p257_p11, %p251_p8 }
  0x1e   :  { %v131_v42 = vrot.slane %v130_v34, 2  ;;  %v137_v43 = vmax.f32 %v135_v27, %v136_v35  ;;  %v53_v44 = vrot.slane %v52_v36, 1  ;;  %v67_v46 = vrot.slane %v66_v38, 1  ;;  %v36_v11 = vld [vmem:[#allocation2 + $0x2] sm:$0x3] }
  0x1f   :  { %v59_v45 = vadd.f32 %v58_v37, %v57_v29  ;;  %v73_v47 = vadd.f32 %v72_v39, %v71_v31  ;;  %v118_v48 = vmax.f32 %v116_v32, %v117_v40  ;;  %v124_v49 = vrot.slane %v123_v41, 2  ;;  %v37_v20 = vld [vmem:[#allocation3] sm:$0x3]  ;;  %v38_v21 = vld [vmem:[#allocation3 + $0x2] sm:$0x3] }
  0x20   :  { %v132_v50 = vmax.f32 %v130_v34, %v131_v42  ;;  %v138_v51 = vrot.slane %v137_v43, 2  ;;  %v54_v52 = vadd.f32 %v53_v44, %v52_v36  ;;  %v68_v54 = vadd.f32 %v67_v46, %v66_v38 }
  0x21   :  { %v60_v53 = vrot.slane %v59_v45, 1  ;;  %v74_v55 = vrot.slane %v73_v47, 1  ;;  %v119_v56 = vrot.slane %v118_v48, 1  ;;  %v125_v57 = vmax.f32 %v123_v41, %v124_v49 }
  0x22   :  { %v133_v58 = vrot.slane %v132_v50, 1  ;;  %v139_v59 = vmax.f32 %v137_v43, %v138_v51  ;;  %v86_v61 = vsub.s32 %v83_v18, %v85_v16 }
  0x23   :  { %v61_v60 = vadd.f32 %v60_v53, %v59_v45  ;;  %v75_v62 = vadd.f32 %v74_v55, %v73_v47  ;;  %v120_v63 = vmax.f32 %v118_v48, %v119_v56  ;;  %v126_v0 = vrot.slane %v125_v57, 1 }
  0x24   :  { %v134_v2 = vmax.f32 %v132_v50, %v133_v58  ;;  %v140_v3 = vrot.slane %v139_v59, 1 }
  0x25   :  { %v80_v4 = vcombine.low %v54_v52, %v61_v60  ;;  %v95_v5 = vcombine.low %v68_v54, %v75_v62  ;;  %v127_v6 = vmax.f32 %v125_v57, %v126_v0 }
  0x26   :  { %v141_v7 = vmax.f32 %v139_v59, %v140_v3 }
  0x27   :  { %v87_v8 = vrot.slane %v80_v4, %v86_v61  ;;  %v102_v9 = vrot.slane %v95_v5, %v86_v61  ;;  %v146_v12 = vcombine.low %v120_v63, %v127_v6 }
  0x28   :  { %v161_v13 = vcombine.low %v134_v2, %v141_v7 }
  0x29   :  { %v94_v14 = vrot.slane %v87_v8, %v86_v61  ;;  %v109_v15 = vrot.slane %v102_v9, %v86_v61  ;;  %v153_v17 = vrot.slane %v146_v12, %v86_v61 }
  0x2a   :  { %v168_v19 = vrot.slane %v161_v13, %v86_v61 }
  0x2b   :  { %v112_v16 = vadd.f32 %v94_v14, %v35_v10  ;;  %v113_v18 = vadd.f32 %v109_v15, %v36_v11  ;;  %v160_v22 = vrot.slane %v153_v17, %v86_v61 }
  0x2c   :  { %v175_v23 = vrot.slane %v168_v19, %v86_v61 }
  0x2d   :  { %184 = vst.msk [vmem:[#allocation2] sm:$0x3] %vm307_vm0, %v112_v16  ;;  %185 = vst.msk [vmem:[#allocation2 + $0x2] sm:$0x3] %vm307_vm0, %v113_v18  ;;  %v191_v24 = vmul.f32 0.25, %v112_v16  ;;  %v192_v25 = vmul.f32 0.25, %v113_v18  ;;  %v178_v26 = vmax.f32 %v37_v20, %v160_v22 }
  0x2e   :  { %v179_v27 = vmax.f32 %v38_v21, %v175_v23 }
  0x2f   :  { %193 = vst.msk [vmem:[#allocation7] ss:$2 sm:$0x3] %vm307_vm0, %v191_v24  ;;  %195 = vst.msk [vmem:[#allocation7 + $0x4] ss:$2 sm:$0x3] %vm307_vm0, %v192_v25 }
  0x30   :  { %186 = vst.msk [vmem:[#allocation3] sm:$0x3] %vm307_vm0, %v178_v26  ;;  %197 = vst.msk [vmem:[#allocation7 + $0x1] ss:$2 sm:$0x3] %vm307_vm0, %v178_v26 }
  0x31   :  { %187 = vst.msk [vmem:[#allocation3 + $0x2] sm:$0x3] %vm307_vm0, %v179_v27  ;;  %199 = vst.msk [vmem:[#allocation7 + $0x5] ss:$2 sm:$0x3] %vm307_vm0, %v179_v27 }
  0x32   :  { %261 = shalt.err (!%p258_p12)
}
  0x33   :  { %s262_s24 = scalar_lea.hbm %s356_s1, 128 }
  0x34   :  { %p263_p13 = scmp.ne.s32.totalorder %s356_s1, %s262_s24  ;;  %p266_p0 = scmp.lt.u32.totalorder %s262_s24, %s356_s1 }
  0x36   :  { %p268_p1 = pnand %p266_p0, %p263_p13 }
  0x38   :  { %271 = shalt.err (!%p268_p1)
}
  0x39   :  { %s283_s29 = smov 64   ;;  %s284_s30 = smov 4  }
  0x3a   :  { %211 = dma.vmem_to_hbm [thread:$0]  %s206_s20, 128, %s356_s1, [#allocation6], %s283_s29, %s283_s29, %s284_s30  }
  0x3b   :  { %274 = dma.done.wait [#allocation6], 128  }
  0x3c   :  { %275 = vsyncadd [#allocation6], 4294967168 }
  0x3d   :  { %215 = vsyncpa [#allocation5], 1 }
  0x3e   :  { %216 = vsyncpa [#allocation6], 1 }

</bundles_post_ra>
